<compile_context>
chip_gen: v7x
topology: tpu7x:2x2x1
jax: 0.10.0
libtpu: 0.0.40
codegen_flags: <defaults>
</compile_context>

<pallas_src>
import functools

import jax
import jax.numpy as jnp
from jax.experimental import pallas as pl
from jax.experimental.pallas import tpu as pltpu

_LANE = 128  # lane width (last dim)


def _round_up(x, m):
    return (x + m - 1) // m * m


def _sublane_for(dtype) -> int:
    """Packed sublane height for a dtype: f32 -> 8, bf16 -> 16, int8/fp8 -> 32."""
    itemsize = jnp.dtype(dtype).itemsize
    return max(8, (8 * 4) // itemsize)


def _make_mlp_kernel(n_layers: int, compute_dtype):
    """Fused MLP kernel for `n_layers` Linear layers.

    Ref order: (x, w_0..w_{L-1}, b_0..b_{L-1}, out).
    Hidden activations: ReLU; final activation: tanh (module defaults).
    Matmuls run in `compute_dtype` on the MXU; accumulation/bias/activation in f32.
    """

    def kernel(*refs):
        x_ref = refs[0]
        w_refs = refs[1:1 + n_layers]
        b_refs = refs[1 + n_layers:1 + 2 * n_layers]
        o_ref = refs[-1]

        h = x_ref[...]
        for i in range(n_layers):
            # MXU matmul in native (bf16) dtype, f32 accumulator.
            acc = jnp.dot(h, w_refs[i][...], preferred_element_type=jnp.float32)
            acc = acc + b_refs[i][...]            # bias already f32
            if i < n_layers - 1:
                acc = jnp.maximum(acc, 0.0)       # activation = relu
                h = acc.astype(compute_dtype)     # back to MXU dtype for next layer
            else:
                h = jnp.tanh(acc)                 # final_activation = tanh
        o_ref[...] = h.astype(o_ref.dtype)

    return kernel


def init_mlp_params(key, in_size, out_size, width_size, depth, dtype=jnp.float32):
    """nn.Linear-style init U(-1/sqrt(fan_in), 1/sqrt(fan_in)).

    Weights are stored as (fan_in, fan_out) (transpose of PyTorch's (out, in))
    so the kernel computes y = x @ W + b directly. Biases are (1, fan_out).
    """
    if depth == 0:
        dims = [(in_size, out_size)]
    else:
        dims = [(in_size, width_size)]
        dims += [(width_size, width_size)] * (depth - 1)
        dims += [(width_size, out_size)]

    weights, biases = [], []
    for (fan_in, fan_out) in dims:
        key, kw, kb = jax.random.split(key, 3)
        bound = 1.0 / jnp.sqrt(jnp.asarray(fan_in, dtype=jnp.float32))
        weights.append(jax.random.uniform(kw, (fan_in, fan_out), dtype, -bound, bound))
        biases.append(jax.random.uniform(kb, (1, fan_out), dtype, -bound, bound))
    return weights, biases


@functools.partial(jax.jit, static_argnames=("compute_dtype",))
def _jax_ref_mlp(x, weights, biases, compute_dtype=jnp.bfloat16):
    """Pure-JAX reference matching the kernel's numerics (bf16 matmul, f32 acc)."""
    h = x.astype(compute_dtype)
    n = len(weights)
    for i, (w, b) in enumerate(zip(weights, biases)):
        acc = jnp.dot(h, w.astype(compute_dtype), preferred_element_type=jnp.float32)
        acc = acc + b.astype(jnp.float32)
        if i < n - 1:
            acc = jnp.maximum(acc, 0.0)
            h = acc.astype(compute_dtype)
        else:
            h = jnp.tanh(acc)
    return h.astype(x.dtype)


def mlp_pallas(x, weights, biases, *, compute_dtype=jnp.bfloat16, tm: int = 512,
               x_buffers: int = 2):
    """Run the fused MLP Pallas kernel.

    x:             (batch, in_size)
    weights:       list of (fan_in, fan_out) arrays
    biases:        list of (1, fan_out) arrays
    compute_dtype: MXU matmul dtype (bf16 default; accumulation always f32)
    tm:            target batch tile (rows per grid step)
    x_buffers:     pipeline depth for the streamed x tiles (raise to 3 if
                   profiling shows exposed DMA)
    """
    n_layers = len(weights)
    batch, in_size = x.shape
    out_size = weights[-1].shape[1]
    out_dtype = x.dtype
    compute_dtype = jnp.dtype(compute_dtype)

    # --- tile / padding geometry -------------------------------------------
    sublane = _sublane_for(compute_dtype)
    tm = _round_up(max(tm, sublane), sublane)
    batch_r = _round_up(batch, sublane)
    # Ensure >=2 grid steps whenever the batch is large enough to split: keeps
    # both v7x TensorCores busy and lets x/out DMA overlap with compute.
    half = _round_up((batch + 1) // 2, sublane)
    tm = min(tm, max(sublane, half), batch_r)
    batch_p = _round_up(batch, tm)

    in_p = _round_up(in_size, _LANE)
    fan_outs_p = [_round_up(w.shape[1], _LANE) for w in weights]
    fan_ins_p = [in_p] + fan_outs_p[:-1]
    out_p = fan_outs_p[-1]

    # --- zero-pad operands (exact for relu-hidden / tanh-final MLP) --------
    x_p = jnp.pad(x.astype(compute_dtype),
                  ((0, batch_p - batch), (0, in_p - in_size)))
    w_p = [jnp.pad(w.astype(compute_dtype),
                   ((0, fi - w.shape[0]), (0, fo - w.shape[1])))
           for w, fi, fo in zip(weights, fan_ins_p, fan_outs_p)]
    # Biases cast to f32 ONCE here (accumulator dtype); padded lanes stay 0.
    b_p = [jnp.pad(b.astype(jnp.float32), ((0, 0), (0, fo - b.shape[1])))
           for b, fo in zip(biases, fan_outs_p)]

    grid = (batch_p // tm,)

    # --- VMEM budget ---------------------------------------------------------
    c_item = compute_dtype.itemsize
    o_item = jnp.dtype(out_dtype).itemsize
    max_feat = max([in_p] + fan_outs_p)
    w_bytes = sum(int(w.size) * c_item for w in w_p)
    b_bytes = sum(int(b.size) * 4 for b in b_p)

    # Generation-aware cap: ~85% of physical VMEM (128 MiB v5e/v6e, 64 MiB v7x).
    try:
        phys_vmem = int(pltpu.get_tpu_info().vmem_capacity_bytes)
    except Exception:
        phys_vmem = 64 * 1024 * 1024
    vmem_cap = int(phys_vmem * 0.85)

    def _vmem_estimate(param_buffers, x_bufs):
        est = x_bufs * tm * in_p * c_item              # streamed x tiles
        est += 2 * tm * out_p * o_item                 # streamed out tiles
        est += param_buffers * (w_bytes + b_bytes)     # resident params
        # In-kernel live intermediates: f32 accumulator + recast hidden + current h.
        est += tm * max_feat * (4 + 2 * c_item)
        return est

    kernel = _make_mlp_kernel(n_layers, compute_dtype)

    def _build(use_pipeline_mode):
        if use_pipeline_mode:
            # Streamed x tiles: explicit (>=2-deep) pipelining.
            x_spec = pl.BlockSpec((tm, in_p), lambda i: (i, 0),
                                  pipeline_mode=pl.Buffered(max(2, x_buffers)))
            const_kw = dict(pipeline_mode=pl.Buffered(1))   # single-buffer residents
            param_buffers, x_bufs = 1, max(2, x_buffers)
        else:
            x_spec = pl.BlockSpec((tm, in_p), lambda i: (i, 0))
            const_kw = {}
            param_buffers, x_bufs = 2, 2

        in_specs = [x_spec]
        # Weights / biases: constant block index -> VMEM-resident across steps.
        in_specs += [pl.BlockSpec(w.shape, lambda i: (0, 0), **const_kw) for w in w_p]
        in_specs += [pl.BlockSpec(b.shape, lambda i: (0, 0), **const_kw) for b in b_p]
        out_specs = pl.BlockSpec((tm, out_p), lambda i: (i, 0))

        vmem_limit = int(min(max(int(_vmem_estimate(param_buffers, x_bufs) * 1.25),
                                 16 * 1024 * 1024),
                             vmem_cap))

        return pl.pallas_call(
            kernel,
            out_shape=jax.ShapeDtypeStruct((batch_p, out_p), out_dtype),
            grid=grid,
            in_specs=in_specs,
            out_specs=out_specs,
            compiler_params=pltpu.CompilerParams(
                dimension_semantics=("parallel",),
                vmem_limit_bytes=vmem_limit,
            ),
        )

    try:
        out_padded = _build(True)(x_p, *w_p, *b_p)
    except Exception:
        # Installed JAX rejects BlockSpec.pipeline_mode in pallas_call — use the
        # default double-buffered pipelining instead.
        out_padded = _build(False)(x_p, *w_p, *b_p)

    return out_padded[:batch, :out_size]


if __name__ == "__main__":
    # Small shapes consistent with the module: MLP(in_size, out_size, width_size, depth)
    in_size, out_size, width_size, depth = 8, 4, 32, 2
    batch = 8

    key = jax.random.PRNGKey(0)
    key, kx = jax.random.split(key)
    x = jax.random.normal(kx, (batch, in_size), jnp.float32)

    weights, biases = init_mlp_params(key, in_size, out_size, width_size, depth)

    out = jax.block_until_ready(mlp_pallas(x, weights, biases))
    ref = jax.block_until_ready(_jax_ref_mlp(x, weights, biases))

    assert out.shape == (batch, out_size)
    assert jnp.allclose(out, ref, atol=1e-4, rtol=1e-4), \
        "Pallas MLP mismatch vs JAX reference"

    print("KERNEL_OK")
</pallas_src>

<mosaic_0001>
module attributes {stable_mosaic.version = 11 : i64} {
  func.func @kernel(%arg0: i32, %arg1: memref<16x128xbf16, #tpu.memory_space<vmem>>, %arg2: memref<128x128xbf16, #tpu.memory_space<vmem>>, %arg3: memref<128x128xbf16, #tpu.memory_space<vmem>>, %arg4: memref<128x128xbf16, #tpu.memory_space<vmem>>, %arg5: memref<1x128xf32, #tpu.memory_space<vmem>>, %arg6: memref<1x128xf32, #tpu.memory_space<vmem>>, %arg7: memref<1x128xf32, #tpu.memory_space<vmem>>, %arg8: memref<16x128xf32, #tpu.memory_space<vmem>>) attributes {dimension_semantics = [#tpu.dimension_semantics<parallel>], iteration_bounds = array<i64: 1>, scalar_prefetch = 0 : i64, scratch_operands = 0 : i64, tpu.core_type = #tpu.core_type<tc>, window_params = [{pipeline_mode = #tpu.pipeline_mode<double_buffered>, transform_indices = @transform_0, window_bounds = array<i64: 16, 128>}, {pipeline_mode = #tpu.pipeline_mode<synchronous>, transform_indices = @transform_1, window_bounds = array<i64: 128, 128>}, {pipeline_mode = #tpu.pipeline_mode<synchronous>, transform_indices = @transform_2, window_bounds = array<i64: 128, 128>}, {pipeline_mode = #tpu.pipeline_mode<synchronous>, transform_indices = @transform_3, window_bounds = array<i64: 128, 128>}, {pipeline_mode = #tpu.pipeline_mode<synchronous>, transform_indices = @transform_4, window_bounds = array<i64: 1, 128>}, {pipeline_mode = #tpu.pipeline_mode<synchronous>, transform_indices = @transform_5, window_bounds = array<i64: 1, 128>}, {pipeline_mode = #tpu.pipeline_mode<synchronous>, transform_indices = @transform_6, window_bounds = array<i64: 1, 128>}, {transform_indices = @transform_7, window_bounds = array<i64: 16, 128>}]} {
    %c0 = arith.constant 0 : index
    %c0_0 = arith.constant 0 : index
    %0 = vector.load %arg1[%c0, %c0_0] : memref<16x128xbf16, #tpu.memory_space<vmem>>, vector<16x128xbf16>
    %c0_1 = arith.constant 0 : index
    %c0_2 = arith.constant 0 : index
    %1 = vector.load %arg2[%c0_1, %c0_2] : memref<128x128xbf16, #tpu.memory_space<vmem>>, vector<128x128xbf16>
    %cst = arith.constant dense<0.000000e+00> : vector<16x128xf32>
    %2 = tpu.matmul %0, %1, %cst {dimension_numbers = #tpu.dot_dimension_numbers<[1], [0], [0], [1], [0, 0, 1, 1], [], []>} : vector<16x128xbf16>, vector<128x128xbf16>, vector<16x128xf32> -> vector<16x128xf32>
    %c0_3 = arith.constant 0 : index
    %c0_4 = arith.constant 0 : index
    %3 = vector.load %arg5[%c0_3, %c0_4] : memref<1x128xf32, #tpu.memory_space<vmem>>, vector<1x128xf32>
    %4 = vector.broadcast %3 : vector<1x128xf32> to vector<16x128xf32>
    %5 = arith.addf %2, %4 : vector<16x128xf32>
    %cst_5 = arith.constant 0.000000e+00 : f32
    %6 = vector.broadcast %cst_5 : f32 to vector<16x128xf32>
    %7 = arith.maximumf %5, %6 : vector<16x128xf32>
    %8 = arith.truncf %7 : vector<16x128xf32> to vector<16x128xbf16>
    %c0_6 = arith.constant 0 : index
    %c0_7 = arith.constant 0 : index
    %9 = vector.load %arg3[%c0_6, %c0_7] : memref<128x128xbf16, #tpu.memory_space<vmem>>, vector<128x128xbf16>
    %cst_8 = arith.constant dense<0.000000e+00> : vector<16x128xf32>
    %10 = tpu.matmul %8, %9, %cst_8 {dimension_numbers = #tpu.dot_dimension_numbers<[1], [0], [0], [1], [0, 0, 1, 1], [], []>} : vector<16x128xbf16>, vector<128x128xbf16>, vector<16x128xf32> -> vector<16x128xf32>
    %c0_9 = arith.constant 0 : index
    %c0_10 = arith.constant 0 : index
    %11 = vector.load %arg6[%c0_9, %c0_10] : memref<1x128xf32, #tpu.memory_space<vmem>>, vector<1x128xf32>
    %12 = vector.broadcast %11 : vector<1x128xf32> to vector<16x128xf32>
    %13 = arith.addf %10, %12 : vector<16x128xf32>
    %cst_11 = arith.constant 0.000000e+00 : f32
    %14 = vector.broadcast %cst_11 : f32 to vector<16x128xf32>
    %15 = arith.maximumf %13, %14 : vector<16x128xf32>
    %16 = arith.truncf %15 : vector<16x128xf32> to vector<16x128xbf16>
    %c0_12 = arith.constant 0 : index
    %c0_13 = arith.constant 0 : index
    %17 = vector.load %arg4[%c0_12, %c0_13] : memref<128x128xbf16, #tpu.memory_space<vmem>>, vector<128x128xbf16>
    %cst_14 = arith.constant dense<0.000000e+00> : vector<16x128xf32>
    %18 = tpu.matmul %16, %17, %cst_14 {dimension_numbers = #tpu.dot_dimension_numbers<[1], [0], [0], [1], [0, 0, 1, 1], [], []>} : vector<16x128xbf16>, vector<128x128xbf16>, vector<16x128xf32> -> vector<16x128xf32>
    %c0_15 = arith.constant 0 : index
    %c0_16 = arith.constant 0 : index
    %19 = vector.load %arg7[%c0_15, %c0_16] : memref<1x128xf32, #tpu.memory_space<vmem>>, vector<1x128xf32>
    %20 = vector.broadcast %19 : vector<1x128xf32> to vector<16x128xf32>
    %21 = arith.addf %18, %20 : vector<16x128xf32>
    %22 = math.tanh %21 : vector<16x128xf32>
    %c0_17 = arith.constant 0 : index
    %c0_18 = arith.constant 0 : index
    %23 = vector.load %arg8[%c0_17, %c0_18] : memref<16x128xf32, #tpu.memory_space<vmem>>, vector<16x128xf32>
    tpu.vector_store %arg8[%c0_17, %c0_18], %22 {strides = array<i32>} : memref<16x128xf32, #tpu.memory_space<vmem>>, vector<16x128xf32>,
    return
  }
  func.func @transform_0(%arg0: i32) -> (i32, i32) {
    %c0_i32 = arith.constant 0 : i32
    %c0_i32_0 = arith.constant 0 : i32
    return %arg0, %c0_i32 : i32, i32
  }
  func.func @transform_1(%arg0: i32) -> (i32, i32) {
    %c0_i32 = arith.constant 0 : i32
    %c0_i32_0 = arith.constant 0 : i32
    %c0_i32_1 = arith.constant 0 : i32
    return %c0_i32, %c0_i32_0 : i32, i32
  }
  func.func @transform_2(%arg0: i32) -> (i32, i32) {
    %c0_i32 = arith.constant 0 : i32
    %c0_i32_0 = arith.constant 0 : i32
    %c0_i32_1 = arith.constant 0 : i32
    return %c0_i32, %c0_i32_0 : i32, i32
  }
  func.func @transform_3(%arg0: i32) -> (i32, i32) {
    %c0_i32 = arith.constant 0 : i32
    %c0_i32_0 = arith.constant 0 : i32
    %c0_i32_1 = arith.constant 0 : i32
    return %c0_i32, %c0_i32_0 : i32, i32
  }
  func.func @transform_4(%arg0: i32) -> (i32, i32) {
    %c0_i32 = arith.constant 0 : i32
    %c0_i32_0 = arith.constant 0 : i32
    %c0_i32_1 = arith.constant 0 : i32
    return %c0_i32, %c0_i32_0 : i32, i32
  }
  func.func @transform_5(%arg0: i32) -> (i32, i32) {
    %c0_i32 = arith.constant 0 : i32
    %c0_i32_0 = arith.constant 0 : i32
    %c0_i32_1 = arith.constant 0 : i32
    return %c0_i32, %c0_i32_0 : i32, i32
  }
  func.func @transform_6(%arg0: i32) -> (i32, i32) {
    %c0_i32 = arith.constant 0 : i32
    %c0_i32_0 = arith.constant 0 : i32
    %c0_i32_1 = arith.constant 0 : i32
    return %c0_i32, %c0_i32_0 : i32, i32
  }
  func.func @transform_7(%arg0: i32) -> (i32, i32) {
    %c0_i32 = arith.constant 0 : i32
    %c0_i32_0 = arith.constant 0 : i32
    return %arg0, %c0_i32 : i32, i32
  }
}

module attributes {stable_mosaic.version = 11 : i64} {
  func.func @kernel(%arg0: i32, %arg1: memref<16x128xbf16, #tpu.memory_space<vmem>>, %arg2: memref<128x128xbf16, #tpu.memory_space<vmem>>, %arg3: memref<128x128xbf16, #tpu.memory_space<vmem>>, %arg4: memref<128x128xbf16, #tpu.memory_space<vmem>>, %arg5: memref<1x128xf32, #tpu.memory_space<vmem>>, %arg6: memref<1x128xf32, #tpu.memory_space<vmem>>, %arg7: memref<1x128xf32, #tpu.memory_space<vmem>>, %arg8: memref<16x128xf32, #tpu.memory_space<vmem>>) attributes {dimension_semantics = [#tpu.dimension_semantics<parallel>], iteration_bounds = array<i64: 1>, scalar_prefetch = 0 : i64, scratch_operands = 0 : i64, tpu.core_type = #tpu.core_type<tc>, window_params = [{transform_indices = @transform_0, window_bounds = array<i64: 16, 128>}, {pipeline_mode = #tpu.pipeline_mode<synchronous>, transform_indices = @transform_1, window_bounds = array<i64: 128, 128>}, {pipeline_mode = #tpu.pipeline_mode<synchronous>, transform_indices = @transform_2, window_bounds = array<i64: 128, 128>}, {pipeline_mode = #tpu.pipeline_mode<synchronous>, transform_indices = @transform_3, window_bounds = array<i64: 128, 128>}, {pipeline_mode = #tpu.pipeline_mode<synchronous>, transform_indices = @transform_4, window_bounds = array<i64: 1, 128>}, {pipeline_mode = #tpu.pipeline_mode<synchronous>, transform_indices = @transform_5, window_bounds = array<i64: 1, 128>}, {pipeline_mode = #tpu.pipeline_mode<synchronous>, transform_indices = @transform_6, window_bounds = array<i64: 1, 128>}, {transform_indices = @transform_7, window_bounds = array<i64: 16, 128>}]} {
    %c0 = arith.constant 0 : index
    %c0_0 = arith.constant 0 : index
    %0 = vector.load %arg1[%c0, %c0_0] : memref<16x128xbf16, #tpu.memory_space<vmem>>, vector<16x128xbf16>
    %c0_1 = arith.constant 0 : index
    %c0_2 = arith.constant 0 : index
    %1 = vector.load %arg2[%c0_1, %c0_2] : memref<128x128xbf16, #tpu.memory_space<vmem>>, vector<128x128xbf16>
    %cst = arith.constant dense<0.000000e+00> : vector<16x128xf32>
    %2 = tpu.matmul %0, %1, %cst {dimension_numbers = #tpu.dot_dimension_numbers<[1], [0], [0], [1], [0, 0, 1, 1], [], []>} : vector<16x128xbf16>, vector<128x128xbf16>, vector<16x128xf32> -> vector<16x128xf32>
    %c0_3 = arith.constant 0 : index
    %c0_4 = arith.constant 0 : index
    %3 = vector.load %arg5[%c0_3, %c0_4] : memref<1x128xf32, #tpu.memory_space<vmem>>, vector<1x128xf32>
    %4 = vector.broadcast %3 : vector<1x128xf32> to vector<16x128xf32>
    %5 = arith.addf %2, %4 : vector<16x128xf32>
    %cst_5 = arith.constant 0.000000e+00 : f32
    %6 = vector.broadcast %cst_5 : f32 to vector<16x128xf32>
    %7 = arith.maximumf %5, %6 : vector<16x128xf32>
    %8 = arith.truncf %7 : vector<16x128xf32> to vector<16x128xbf16>
    %c0_6 = arith.constant 0 : index
    %c0_7 = arith.constant 0 : index
    %9 = vector.load %arg3[%c0_6, %c0_7] : memref<128x128xbf16, #tpu.memory_space<vmem>>, vector<128x128xbf16>
    %cst_8 = arith.constant dense<0.000000e+00> : vector<16x128xf32>
    %10 = tpu.matmul %8, %9, %cst_8 {dimension_numbers = #tpu.dot_dimension_numbers<[1], [0], [0], [1], [0, 0, 1, 1], [], []>} : vector<16x128xbf16>, vector<128x128xbf16>, vector<16x128xf32> -> vector<16x128xf32>
    %c0_9 = arith.constant 0 : index
    %c0_10 = arith.constant 0 : index
    %11 = vector.load %arg6[%c0_9, %c0_10] : memref<1x128xf32, #tpu.memory_space<vmem>>, vector<1x128xf32>
    %12 = vector.broadcast %11 : vector<1x128xf32> to vector<16x128xf32>
    %13 = arith.addf %10, %12 : vector<16x128xf32>
    %cst_11 = arith.constant 0.000000e+00 : f32
    %14 = vector.broadcast %cst_11 : f32 to vector<16x128xf32>
    %15 = arith.maximumf %13, %14 : vector<16x128xf32>
    %16 = arith.truncf %15 : vector<16x128xf32> to vector<16x128xbf16>
    %c0_12 = arith.constant 0 : index
    %c0_13 = arith.constant 0 : index
    %17 = vector.load %arg4[%c0_12, %c0_13] : memref<128x128xbf16, #tpu.memory_space<vmem>>, vector<128x128xbf16>
    %cst_14 = arith.constant dense<0.000000e+00> : vector<16x128xf32>
    %18 = tpu.matmul %16, %17, %cst_14 {dimension_numbers = #tpu.dot_dimension_numbers<[1], [0], [0], [1], [0, 0, 1, 1], [], []>} : vector<16x128xbf16>, vector<128x128xbf16>, vector<16x128xf32> -> vector<16x128xf32>
    %c0_15 = arith.constant 0 : index
    %c0_16 = arith.constant 0 : index
    %19 = vector.load %arg7[%c0_15, %c0_16] : memref<1x128xf32, #tpu.memory_space<vmem>>, vector<1x128xf32>
    %20 = vector.broadcast %19 : vector<1x128xf32> to vector<16x128xf32>
    %21 = arith.addf %18, %20 : vector<16x128xf32>
    %22 = math.tanh %21 : vector<16x128xf32>
    %c0_17 = arith.constant 0 : index
    %c0_18 = arith.constant 0 : index
    %23 = vector.load %arg8[%c0_17, %c0_18] : memref<16x128xf32, #tpu.memory_space<vmem>>, vector<16x128xf32>
    tpu.vector_store %arg8[%c0_17, %c0_18], %22 {strides = array<i32>} : memref<16x128xf32, #tpu.memory_space<vmem>>, vector<16x128xf32>,
    return
  }
  func.func @transform_0(%arg0: i32) -> (i32, i32) {
    %c0_i32 = arith.constant 0 : i32
    %c0_i32_0 = arith.constant 0 : i32
    return %arg0, %c0_i32 : i32, i32
  }
  func.func @transform_1(%arg0: i32) -> (i32, i32) {
    %c0_i32 = arith.constant 0 : i32
    %c0_i32_0 = arith.constant 0 : i32
    %c0_i32_1 = arith.constant 0 : i32
    return %c0_i32, %c0_i32_0 : i32, i32
  }
  func.func @transform_2(%arg0: i32) -> (i32, i32) {
    %c0_i32 = arith.constant 0 : i32
    %c0_i32_0 = arith.constant 0 : i32
    %c0_i32_1 = arith.constant 0 : i32
    return %c0_i32, %c0_i32_0 : i32, i32
  }
  func.func @transform_3(%arg0: i32) -> (i32, i32) {
    %c0_i32 = arith.constant 0 : i32
    %c0_i32_0 = arith.constant 0 : i32
    %c0_i32_1 = arith.constant 0 : i32
    return %c0_i32, %c0_i32_0 : i32, i32
  }
  func.func @transform_4(%arg0: i32) -> (i32, i32) {
    %c0_i32 = arith.constant 0 : i32
    %c0_i32_0 = arith.constant 0 : i32
    %c0_i32_1 = arith.constant 0 : i32
    return %c0_i32, %c0_i32_0 : i32, i32
  }
  func.func @transform_5(%arg0: i32) -> (i32, i32) {
    %c0_i32 = arith.constant 0 : i32
    %c0_i32_0 = arith.constant 0 : i32
    %c0_i32_1 = arith.constant 0 : i32
    return %c0_i32, %c0_i32_0 : i32, i32
  }
  func.func @transform_6(%arg0: i32) -> (i32, i32) {
    %c0_i32 = arith.constant 0 : i32
    %c0_i32_0 = arith.constant 0 : i32
    %c0_i32_1 = arith.constant 0 : i32
    return %c0_i32, %c0_i32_0 : i32, i32
  }
  func.func @transform_7(%arg0: i32) -> (i32, i32) {
    %c0_i32 = arith.constant 0 : i32
    %c0_i32_0 = arith.constant 0 : i32
    return %arg0, %c0_i32 : i32, i32
  }
}

</mosaic_0001>

<bundles_post_ra>
// kernel: tpu_custom_call.1
= control target key start
LH: loop header
LB: loop body
LE: loop exit
PB: predicated region body
PF: predicated region fallthrough
CT: control target
= control target key end

     0   :  { %12 = vsyncpa [#allocation3], 0  ;;  %s905_s0 = inlined_call_operand.hbm [shape: bf16[16,128], index: 0, kind: input, shape index: {}]   ;;  %s906_s1 = inlined_call_operand.hbm [shape: bf16[128,128], index: 1, kind: input, shape index: {}]   ;;  %s907_s2 = inlined_call_operand.hbm [shape: bf16[128,128], index: 2, kind: input, shape index: {}]   ;;  %s908_s3 = inlined_call_operand.hbm [shape: bf16[128,128], index: 3, kind: input, shape index: {}]   ;;  %s909_s4 = inlined_call_operand.vmem [shape: f32[1,128], index: 4, kind: input, shape index: {}]   ;;  %s910_s5 = inlined_call_operand.vmem [shape: f32[1,128], index: 5, kind: input, shape index: {}]   ;;  %s911_s6 = inlined_call_operand.vmem [shape: f32[1,128], index: 6, kind: input, shape index: {}]   ;;  %s912_s7 = inlined_call_operand.hbm [shape: f32[16,128], index: 7, kind: output, shape index: {}]  }
   0x1   :  { %13 = vsyncpa [#allocation6], 0 }
   0x2   :  { %14 = vsyncpa [#allocation9], 0 }
   0x3   :  { %15 = vsyncpa [#allocation4], 0  ;;  %s729_s24 = smov [#allocation5]   ;;  %s730_s26 = smov [#allocation2]  }
   0x4   :  { %s33_s25 = sshll.u32 %s729_s24, 4  ;;  %s21_s27 = sshll.u32 %s730_s26, 4  ;;  %s34_s25 = int_to_ptr.vmem [resolvable:$true] %s33_s25  ;;  %s780_s27 = int_to_ptr.vmem [resolvable:$true] %s21_s27 }
   0x5   :  { %s611_s30 = scalar_lea.hbm %s906_s1, 1024 }
   0x6   :  { %p612_p0 = scmp.ne.s32.totalorder %s906_s1, %s611_s30  ;;  %p615_p1 = scmp.lt.u32.totalorder %s611_s30, %s906_s1 }
   0x8   :  { %p617_p2 = pnand %p615_p1, %p612_p0 }
   0xa   :  { %620 = shalt.err (!%p617_p2)
}
   0xb   :  { %s621_s12 = scalar_lea.vmem %s34_s25, 1024  ;;  %p626_p4 = scmp.lt.s32.totalorder %s34_s25, %s34_s25 }
   0xc   :  { %p622_p3 = scmp.ne.s32.totalorder %s34_s25, %s621_s12  ;;  %p627_p5 = scmp.lt.s32.totalorder %s621_s12, %s621_s12 }
   0xe   :  { %p628_p6 = por %p627_p5, %p626_p4 }
  0x10   :  { %p629_p7 = pnand %p628_p6, %p622_p3 }
  0x12   :  { %632 = shalt.err (!%p629_p7)
}
  0x13   :  { %s731_s13 = smov 64   ;;  %s732_s14 = smov 4  }
  0x14   :  { %39 = dma.hbm_to_vmem [thread:$0]  %s906_s1, 1024, %s34_s25, [#allocation6], %s731_s13, %s731_s13, %s732_s14  }
  0x15   :  { %s633_s19 = scalar_lea.hbm %s905_s0, 128 }
  0x16   :  { %p634_p8 = scmp.ne.s32.totalorder %s905_s0, %s633_s19  ;;  %p637_p9 = scmp.lt.u32.totalorder %s633_s19, %s905_s0 }
  0x18   :  { %p639_p10 = pnand %p637_p9, %p634_p8 }
  0x1a   :  { %642 = shalt.err (!%p639_p10)
}
  0x1b   :  { %s643_s24 = scalar_lea.vmem %s780_s27, 128  ;;  %p648_p12 = scmp.lt.s32.totalorder %s780_s27, %s780_s27 }
  0x1c   :  { %p644_p11 = scmp.ne.s32.totalorder %s780_s27, %s643_s24  ;;  %p649_p13 = scmp.lt.s32.totalorder %s643_s24, %s643_s24 }
  0x1e   :  { %p650_p0 = por %p649_p13, %p648_p12 }
  0x20   :  { %p651_p1 = pnand %p650_p0, %p644_p11 }
  0x22   :  { %654 = shalt.err (!%p651_p1)
}
  0x23   :  { %27 = dma.hbm_to_vmem [thread:$0]  %s905_s0, 128, %s780_s27, [#allocation3], %s731_s13, %s731_s13, %s732_s14  }
  0x24   :  { %s733_s26 = smov [#allocation7]   ;;  %s734_s29 = smov [#allocation8]  }
  0x25   :  { %s45_s28 = sshll.u32 %s733_s26, 4  ;;  %s57_s30 = sshll.u32 %s734_s29, 4  ;;  %s46_s28 = int_to_ptr.vmem [resolvable:$true] %s45_s28  ;;  %s817_s30 = int_to_ptr.vmem [resolvable:$true] %s57_s30 }
  0x26   :  { %s655_s10 = scalar_lea.hbm %s907_s2, 1024 }
  0x27   :  { %p656_p2 = scmp.ne.s32.totalorder %s907_s2, %s655_s10  ;;  %p659_p3 = scmp.lt.u32.totalorder %s655_s10, %s907_s2 }
  0x29   :  { %p661_p4 = pnand %p659_p3, %p656_p2 }
  0x2b   :  { %664 = shalt.err (!%p661_p4)
}
  0x2c   :  { %s665_s0 = scalar_lea.vmem %s46_s28, 1024  ;;  %p670_p6 = scmp.lt.s32.totalorder %s46_s28, %s46_s28 }
  0x2d   :  { %p666_p5 = scmp.ne.s32.totalorder %s46_s28, %s665_s0  ;;  %p671_p7 = scmp.lt.s32.totalorder %s665_s0, %s665_s0 }
  0x2f   :  { %p672_p8 = por %p671_p7, %p670_p6 }
  0x31   :  { %p673_p9 = pnand %p672_p8, %p666_p5 }
  0x33   :  { %676 = shalt.err (!%p673_p9)
}
  0x34   :  { %51 = dma.hbm_to_vmem [thread:$0]  %s907_s2, 1024, %s46_s28, [#allocation6], %s731_s13, %s731_s13, %s732_s14  }
  0x35   :  { %s677_s20 = scalar_lea.hbm %s908_s3, 1024 }
  0x36   :  { %p678_p10 = scmp.ne.s32.totalorder %s908_s3, %s677_s20  ;;  %p681_p11 = scmp.lt.u32.totalorder %s677_s20, %s908_s3 }
  0x38   :  { %p683_p12 = pnand %p681_p11, %p678_p10 }
  0x3a   :  { %686 = shalt.err (!%p683_p12)
}
  0x3b   :  { %s687_s1 = scalar_lea.vmem %s817_s30, 1024  ;;  %p692_p0 = scmp.lt.s32.totalorder %s817_s30, %s817_s30 }
  0x3c   :  { %p688_p13 = scmp.ne.s32.totalorder %s817_s30, %s687_s1  ;;  %p693_p1 = scmp.lt.s32.totalorder %s687_s1, %s687_s1 }
  0x3e   :  { %p694_p2 = por %p693_p1, %p692_p0 }
  0x40   :  { %p695_p3 = pnand %p694_p2, %p688_p13 }
  0x42   :  { %698 = shalt.err (!%p695_p3)
}
  0x43   :  { %63 = dma.hbm_to_vmem [thread:$0]  %s908_s3, 1024, %s817_s30, [#allocation9], %s731_s13, %s731_s13, %s732_s14  }
  0x44   :  { %721 = dma.done.wait [#allocation3], 128  }
  0x45   :  { %722 = vsyncadd [#allocation3], 4294967168 }
  0x46   :  { %723 = dma.done.wait [#allocation6], 2048  }
  0x47   :  { %724 = vsyncadd [#allocation6], 4294965248 }
  0x48   :  { %725 = dma.done.wait [#allocation9], 1024  }
  0x49   :  { %726 = vsyncadd [#allocation9], 4294966272  ;;  %v735_v0 = vmov 0.0   ;;  %vm736_vm0 = vmmov 0   ;;  %v582_v1 = vld [vmem:[#allocation5] sm:$0xff]   ;;  %v583_v2 = vld [vmem:[#allocation5 + $0x8] sm:$0xff]  }
  0x4a   :  { %511 = vmatprep.subr.bf16.mxu0 %v735_v0  ;;  %527 = vmatprep.mubr.msk.bf16.mxu0 %vm736_vm0, %v735_v0  ;;  %v584_v3 = vld [vmem:[#allocation5 + $0x10] sm:$0xff]   ;;  %v591_v4 = vld [vmem:[#allocation7] sm:$0xff]   ;;  %v585_v5 = vld [vmem:[#allocation5 + $0x18] sm:$0xff]  }
  0x4b   :  { %531 = vmatprep.subr.bf16.mxu1 %v735_v0  ;;  %547 = vmatprep.mubr.msk.bf16.mxu1 %vm736_vm0, %v735_v0  ;;  %v592_v6 = vld [vmem:[#allocation7 + $0x8] sm:$0xff]   ;;  %v586_v7 = vld [vmem:[#allocation5 + $0x20] sm:$0xff]   ;;  %v593_v8 = vld [vmem:[#allocation7 + $0x10] sm:$0xff]  }
  0x4c   :  { %512 = vmatpush3.bf16.msra.mxu0 %v582_v1  ;;  %532 = vmatpush3.bf16.msra.mxu1 %v591_v4  ;;  %v587_v9 = vld [vmem:[#allocation5 + $0x28] sm:$0xff]   ;;  %v594_v10 = vld [vmem:[#allocation7 + $0x18] sm:$0xff]   ;;  %v588_v11 = vld [vmem:[#allocation5 + $0x30] sm:$0xff]  }
  0x4d   :  { %513 = vmatprep.subr.bf16.mxu0 %v735_v0  ;;  %533 = vmatprep.subr.bf16.mxu1 %v735_v0  ;;  %v595_v12 = vld [vmem:[#allocation7 + $0x20] sm:$0xff]   ;;  %v589_v13 = vld [vmem:[#allocation5 + $0x38] sm:$0xff]   ;;  %v596_v14 = vld [vmem:[#allocation7 + $0x28] sm:$0xff]  }
  0x4e   :  { %v590_v15 = vld [vmem:[#allocation2] sm:$0xff]   ;;  %v597_v16 = vld [vmem:[#allocation7 + $0x30] sm:$0xff]   ;;  %v599_v18 = vld [vmem:[#allocation8] sm:$0xff]  }
  0x4f   :  { %v598_v17 = vld [vmem:[#allocation7 + $0x38] sm:$0xff]   ;;  %v600_v19 = vld [vmem:[#allocation8 + $0x8] sm:$0xff]   ;;  %v601_v20 = vld [vmem:[#allocation8 + $0x10] sm:$0xff]  }
  0x50   :  { %514 = vmatpush3.bf16.msra.mxu0 %v583_v2  ;;  %534 = vmatpush3.bf16.msra.mxu1 %v592_v6  ;;  %v602_v21 = vld [vmem:[#allocation8 + $0x18] sm:$0xff]   ;;  %v603_v22 = vld [vmem:[#allocation8 + $0x20] sm:$0xff]   ;;  %v604_v23 = vld [vmem:[#allocation8 + $0x28] sm:$0xff]  }
  0x51   :  { %515 = vmatprep.subr.bf16.mxu0 %v735_v0  ;;  %535 = vmatprep.subr.bf16.mxu1 %v735_v0  ;;  %v456_v24 = vld [vmem:[%s909_s4] ss:$0 sm:$0xff]  ;;  %v605_v34 = vld [vmem:[#allocation8 + $0x30] sm:$0xff]  }
  0x52   :  { %v606_v35 = vld [vmem:[#allocation8 + $0x38] sm:$0xff]  }
  0x53   :  { %v466_v36 = vld [vmem:[%s910_s5] ss:$0 sm:$0xff]  ;;  %s737_s5 = smov [#allocation10]  }
  0x54   :  { %516 = vmatpush3.bf16.msra.mxu0 %v584_v3  ;;  %536 = vmatpush3.bf16.msra.mxu1 %v593_v8  ;;  %v475_v46 = vld [vmem:[%s911_s6] ss:$0 sm:$0xff]  ;;  %s442_s29 = sshll.u32 %s737_s5, 4  ;;  %s443_s29 = int_to_ptr.vmem [resolvable:$true] %s442_s29 }
  0x55   :  { %517 = vmatprep.subr.bf16.mxu0 %v735_v0  ;;  %537 = vmatprep.subr.bf16.mxu1 %v735_v0  ;;  %s699_s30 = scalar_lea.vmem %s443_s29, 256  ;;  %p704_p5 = scmp.lt.s32.totalorder %s443_s29, %s443_s29 }
  0x56   :  { %p700_p4 = scmp.ne.s32.totalorder %s443_s29, %s699_s30  ;;  %p705_p6 = scmp.lt.s32.totalorder %s699_s30, %s699_s30 }
  0x58   :  { %518 = vmatpush3.bf16.msra.mxu0 %v585_v5  ;;  %538 = vmatpush3.bf16.msra.mxu1 %v594_v10  ;;  %p706_p7 = por %p705_p6, %p704_p5 }
  0x59   :  { %519 = vmatprep.subr.bf16.mxu0 %v735_v0  ;;  %539 = vmatprep.subr.bf16.mxu1 %v735_v0 }
  0x5a   :  { %p707_p8 = pnand %p706_p7, %p700_p4 }
  0x5c   :  { %520 = vmatpush3.bf16.msra.mxu0 %v586_v7  ;;  %540 = vmatpush3.bf16.msra.mxu1 %v595_v12 }
  0x5d   :  { %521 = vmatprep.subr.bf16.mxu0 %v735_v0  ;;  %541 = vmatprep.subr.bf16.mxu1 %v735_v0 }
  0x60   :  { %522 = vmatpush3.bf16.msra.mxu0 %v587_v9  ;;  %542 = vmatpush3.bf16.msra.mxu1 %v596_v14 }
  0x61   :  { %523 = vmatprep.subr.bf16.mxu0 %v735_v0  ;;  %543 = vmatprep.subr.bf16.mxu1 %v735_v0 }
  0x64   :  { %524 = vmatpush3.bf16.msra.mxu0 %v588_v11  ;;  %544 = vmatpush3.bf16.msra.mxu1 %v597_v16 }
  0x65   :  { %525 = vmatprep.subr.bf16.mxu0 %v735_v0  ;;  %545 = vmatprep.subr.bf16.mxu1 %v735_v0 }
  0x68   :  { %526 = vmatpush3.bf16.msra.mxu0 %v589_v13  ;;  %546 = vmatpush3.bf16.msra.mxu1 %v598_v17 }
  0x69   :  { %551 = vmatprep.subr.bf16.mxu0 %v735_v0 }
  0x6b   :  { %528 = vmatmul.mubr.bf16.vlgmr.msra.gmra.mrb[0].mxu0 %v590_v15 }
  0x6c   :  { %567 = vmatprep.mubr.msk.bf16.mxu0 %vm736_vm0, %v735_v0  ;;  %552 = vmatpush3.bf16.msra.mxu0 %v599_v18 }
  0x6d   :  { %553 = vmatprep.subr.bf16.mxu0 %v735_v0 }
  0x70   :  { %554 = vmatpush3.bf16.msra.mxu0 %v600_v19 }
  0x71   :  { %555 = vmatprep.subr.bf16.mxu0 %v735_v0 }
  0x74   :  { %556 = vmatpush3.bf16.msra.mxu0 %v601_v20 }
  0x75   :  { %557 = vmatprep.subr.bf16.mxu0 %v735_v0 }
  0x78   :  { %558 = vmatpush3.bf16.msra.mxu0 %v602_v21 }
  0x79   :  { %559 = vmatprep.subr.bf16.mxu0 %v735_v0 }
  0x7c   :  { %560 = vmatpush3.bf16.msra.mxu0 %v603_v22 }
  0x7d   :  { %561 = vmatprep.subr.bf16.mxu0 %v735_v0 }
  0x80   :  { %562 = vmatpush3.bf16.msra.mxu0 %v604_v23 }
  0x81   :  { %563 = vmatprep.subr.bf16.mxu0 %v735_v0 }
  0x84   :  { %564 = vmatpush3.bf16.msra.mxu0 %v605_v34 }
  0x85   :  { %565 = vmatprep.subr.bf16.mxu0 %v735_v0 }
  0x88   :  { %566 = vmatpush3.bf16.msra.mxu0 %v606_v35 }
 0x13e   :  { %v196_v25 = vpop.f32.mrb[0].mxu0 }
 0x13f   :  { %v197_v26 = vadd.f32 %v456_v24, %v196_v25  ;;  %v529_v27 = vpop.f32.mrb[1].mxu0 }
 0x140   :  { %v199_v28 = vpop.f32.mrb[2].mxu0 }
 0x141   :  { %v200_v29 = vadd.f32 %v456_v24, %v199_v28  ;;  %v530_v30 = vpop.f32.mrb[3].mxu0  ;;  %v203_v31 = vmax.f32 %v197_v26, 0.0 }
 0x143   :  { %v204_v32 = vmax.f32 %v200_v29, 0.0 }
 0x145   :  { %v205_v33 = vpack.c.bf16 %v204_v32, %v203_v31 }
 0x147   :  { %548 = vmatmul.mubr.bf16.vlgmr.msra.gmra.mrb[0].mxu1 %v205_v33 }
 0x21a   :  { %v311_v37 = vpop.f32.mrb[0].mxu1 }
 0x21b   :  { %v312_v38 = vadd.f32 %v466_v36, %v311_v37  ;;  %v549_v39 = vpop.f32.mrb[1].mxu1 }
 0x21c   :  { %v314_v40 = vpop.f32.mrb[2].mxu1 }
 0x21d   :  { %v315_v41 = vadd.f32 %v466_v36, %v314_v40  ;;  %v550_v42 = vpop.f32.mrb[3].mxu1  ;;  %v318_v43 = vmax.f32 %v312_v38, 0.0 }
 0x21f   :  { %v319_v44 = vmax.f32 %v315_v41, 0.0 }
 0x221   :  { %v320_v45 = vpack.c.bf16 %v319_v44, %v318_v43 }
 0x223   :  { %568 = vmatmul.mubr.bf16.vlgmr.msra.gmra.mrb[4].mxu0 %v320_v45 }
 0x2f6   :  { %v426_v47 = vpop.f32.mrb[4].mxu0 }
 0x2f7   :  { %v427_v48 = vadd.f32 %v475_v46, %v426_v47  ;;  %v569_v49 = vpop.f32.mrb[5].mxu0 }
 0x2f8   :  { %v429_v50 = vpop.f32.mrb[6].mxu0 }
 0x2f9   :  { %607 = vtanh.f32 %v427_v48  ;;  %v430_v51 = vadd.f32 %v475_v46, %v429_v50  ;;  %v570_v52 = vpop.f32.mrb[7].mxu0 }
 0x2fb   :  { %609 = vtanh.f32 %v430_v51 }
 0x303   :  { %v608_v53 = vpop.eup %607 }
 0x304   :  { %435 = vst [vmem:[#allocation10] sm:$0xff] %v608_v53 }
 0x305   :  { %v610_v54 = vpop.eup %609 }
 0x306   :  { %436 = vst [vmem:[#allocation10 + $0x8] sm:$0xff] %v610_v54 }
 0x307   :  { %710 = shalt.err (!%p707_p8)
}
 0x308   :  { %s711_s9 = scalar_lea.hbm %s912_s7, 256 }
 0x309   :  { %p712_p9 = scmp.ne.s32.totalorder %s912_s7, %s711_s9  ;;  %p715_p10 = scmp.lt.u32.totalorder %s711_s9, %s912_s7 }
 0x30b   :  { %p717_p11 = pnand %p715_p10, %p712_p9 }
 0x30d   :  { %720 = shalt.err (!%p717_p11)
}
 0x30e   :  { %s738_s16 = smov 128   ;;  %s739_s0 = smov 8  }
 0x30f   :  { %448 = dma.vmem_to_hbm [thread:$0]  %s443_s29, 256, %s912_s7, [#allocation4], %s738_s16, %s738_s16, %s739_s0  }
 0x310   :  { %727 = dma.done.wait [#allocation4], 256  }
 0x311   :  { %728 = vsyncadd [#allocation4], 4294967040 }
 0x312   :  { %452 = vsyncpa [#allocation3], 1 }
 0x313   :  { %453 = vsyncpa [#allocation6], 1 }
 0x314   :  { %454 = vsyncpa [#allocation9], 1 }
 0x315   :  { %455 = vsyncpa [#allocation4], 1 }

// kernel: tpu_custom_call.1
= control target key start
LH: loop header
LB: loop body
LE: loop exit
PB: predicated region body
PF: predicated region fallthrough
CT: control target
= control target key end

     0   :  { %12 = vsyncpa [#allocation3], 0  ;;  %s905_s0 = inlined_call_operand.hbm [shape: bf16[16,128], index: 0, kind: input, shape index: {}]   ;;  %s906_s1 = inlined_call_operand.hbm [shape: bf16[128,128], index: 1, kind: input, shape index: {}]   ;;  %s907_s2 = inlined_call_operand.hbm [shape: bf16[128,128], index: 2, kind: input, shape index: {}]   ;;  %s908_s3 = inlined_call_operand.hbm [shape: bf16[128,128], index: 3, kind: input, shape index: {}]   ;;  %s909_s4 = inlined_call_operand.vmem [shape: f32[1,128], index: 4, kind: input, shape index: {}]   ;;  %s910_s5 = inlined_call_operand.vmem [shape: f32[1,128], index: 5, kind: input, shape index: {}]   ;;  %s911_s6 = inlined_call_operand.vmem [shape: f32[1,128], index: 6, kind: input, shape index: {}]   ;;  %s912_s7 = inlined_call_operand.hbm [shape: f32[16,128], index: 7, kind: output, shape index: {}]  }
   0x1   :  { %13 = vsyncpa [#allocation6], 0 }
   0x2   :  { %14 = vsyncpa [#allocation9], 0 }
   0x3   :  { %15 = vsyncpa [#allocation4], 0  ;;  %s729_s24 = smov [#allocation5]   ;;  %s730_s26 = smov [#allocation2]  }
   0x4   :  { %s33_s25 = sshll.u32 %s729_s24, 4  ;;  %s21_s27 = sshll.u32 %s730_s26, 4  ;;  %s34_s25 = int_to_ptr.vmem [resolvable:$true] %s33_s25  ;;  %s780_s27 = int_to_ptr.vmem [resolvable:$true] %s21_s27 }
   0x5   :  { %s611_s30 = scalar_lea.hbm %s906_s1, 1024 }
   0x6   :  { %p612_p0 = scmp.ne.s32.totalorder %s906_s1, %s611_s30  ;;  %p615_p1 = scmp.lt.u32.totalorder %s611_s30, %s906_s1 }
   0x8   :  { %p617_p2 = pnand %p615_p1, %p612_p0 }
   0xa   :  { %620 = shalt.err (!%p617_p2)
}
   0xb   :  { %s621_s12 = scalar_lea.vmem %s34_s25, 1024  ;;  %p626_p4 = scmp.lt.s32.totalorder %s34_s25, %s34_s25 }
   0xc   :  { %p622_p3 = scmp.ne.s32.totalorder %s34_s25, %s621_s12  ;;  %p627_p5 = scmp.lt.s32.totalorder %s621_s12, %s621_s12 }
   0xe   :  { %p628_p6 = por %p627_p5, %p626_p4 }
  0x10   :  { %p629_p7 = pnand %p628_p6, %p622_p3 }
  0x12   :  { %632 = shalt.err (!%p629_p7)
}
  0x13   :  { %s731_s13 = smov 64   ;;  %s732_s14 = smov 4  }
  0x14   :  { %39 = dma.hbm_to_vmem [thread:$0]  %s906_s1, 1024, %s34_s25, [#allocation6], %s731_s13, %s731_s13, %s732_s14  }
  0x15   :  { %s633_s19 = scalar_lea.hbm %s905_s0, 128 }
  0x16   :  { %p634_p8 = scmp.ne.s32.totalorder %s905_s0, %s633_s19  ;;  %p637_p9 = scmp.lt.u32.totalorder %s633_s19, %s905_s0 }
  0x18   :  { %p639_p10 = pnand %p637_p9, %p634_p8 }
  0x1a   :  { %642 = shalt.err (!%p639_p10)
}
  0x1b   :  { %s643_s24 = scalar_lea.vmem %s780_s27, 128  ;;  %p648_p12 = scmp.lt.s32.totalorder %s780_s27, %s780_s27 }
  0x1c   :  { %p644_p11 = scmp.ne.s32.totalorder %s780_s27, %s643_s24  ;;  %p649_p13 = scmp.lt.s32.totalorder %s643_s24, %s643_s24 }
  0x1e   :  { %p650_p0 = por %p649_p13, %p648_p12 }
  0x20   :  { %p651_p1 = pnand %p650_p0, %p644_p11 }
  0x22   :  { %654 = shalt.err (!%p651_p1)
}
  0x23   :  { %27 = dma.hbm_to_vmem [thread:$0]  %s905_s0, 128, %s780_s27, [#allocation3], %s731_s13, %s731_s13, %s732_s14  }
  0x24   :  { %s733_s26 = smov [#allocation7]   ;;  %s734_s29 = smov [#allocation8]  }
  0x25   :  { %s45_s28 = sshll.u32 %s733_s26, 4  ;;  %s57_s30 = sshll.u32 %s734_s29, 4  ;;  %s46_s28 = int_to_ptr.vmem [resolvable:$true] %s45_s28  ;;  %s817_s30 = int_to_ptr.vmem [resolvable:$true] %s57_s30 }
  0x26   :  { %s655_s10 = scalar_lea.hbm %s907_s2, 1024 }
  0x27   :  { %p656_p2 = scmp.ne.s32.totalorder %s907_s2, %s655_s10  ;;  %p659_p3 = scmp.lt.u32.totalorder %s655_s10, %s907_s2 }
  0x29   :  { %p661_p4 = pnand %p659_p3, %p656_p2 }
  0x2b   :  { %664 = shalt.err (!%p661_p4)
}
  0x2c   :  { %s665_s0 = scalar_lea.vmem %s46_s28, 1024  ;;  %p670_p6 = scmp.lt.s32.totalorder %s46_s28, %s46_s28 }
  0x2d   :  { %p666_p5 = scmp.ne.s32.totalorder %s46_s28, %s665_s0  ;;  %p671_p7 = scmp.lt.s32.totalorder %s665_s0, %s665_s0 }
  0x2f   :  { %p672_p8 = por %p671_p7, %p670_p6 }
  0x31   :  { %p673_p9 = pnand %p672_p8, %p666_p5 }
  0x33   :  { %676 = shalt.err (!%p673_p9)
}
  0x34   :  { %51 = dma.hbm_to_vmem [thread:$0]  %s907_s2, 1024, %s46_s28, [#allocation6], %s731_s13, %s731_s13, %s732_s14  }
  0x35   :  { %s677_s20 = scalar_lea.hbm %s908_s3, 1024 }
  0x36   :  { %p678_p10 = scmp.ne.s32.totalorder %s908_s3, %s677_s20  ;;  %p681_p11 = scmp.lt.u32.totalorder %s677_s20, %s908_s3 }
  0x38   :  { %p683_p12 = pnand %p681_p11, %p678_p10 }
  0x3a   :  { %686 = shalt.err (!%p683_p12)
}
  0x3b   :  { %s687_s1 = scalar_lea.vmem %s817_s30, 1024  ;;  %p692_p0 = scmp.lt.s32.totalorder %s817_s30, %s817_s30 }
  0x3c   :  { %p688_p13 = scmp.ne.s32.totalorder %s817_s30, %s687_s1  ;;  %p693_p1 = scmp.lt.s32.totalorder %s687_s1, %s687_s1 }
  0x3e   :  { %p694_p2 = por %p693_p1, %p692_p0 }
  0x40   :  { %p695_p3 = pnand %p694_p2, %p688_p13 }
  0x42   :  { %698 = shalt.err (!%p695_p3)
}
  0x43   :  { %63 = dma.hbm_to_vmem [thread:$0]  %s908_s3, 1024, %s817_s30, [#allocation9], %s731_s13, %s731_s13, %s732_s14  }
  0x44   :  { %721 = dma.done.wait [#allocation3], 128  }
  0x45   :  { %722 = vsyncadd [#allocation3], 4294967168 }
  0x46   :  { %723 = dma.done.wait [#allocation6], 2048  }
  0x47   :  { %724 = vsyncadd [#allocation6], 4294965248 }
  0x48   :  { %725 = dma.done.wait [#allocation9], 1024  }
  0x49   :  { %726 = vsyncadd [#allocation9], 4294966272  ;;  %v735_v0 = vmov 0.0   ;;  %vm736_vm0 = vmmov 0   ;;  %v582_v1 = vld [vmem:[#allocation5] sm:$0xff]   ;;  %v583_v2 = vld [vmem:[#allocation5 + $0x8] sm:$0xff]  }
  0x4a   :  { %511 = vmatprep.subr.bf16.mxu0 %v735_v0  ;;  %527 = vmatprep.mubr.msk.bf16.mxu0 %vm736_vm0, %v735_v0  ;;  %v584_v3 = vld [vmem:[#allocation5 + $0x10] sm:$0xff]   ;;  %v591_v4 = vld [vmem:[#allocation7] sm:$0xff]   ;;  %v585_v5 = vld [vmem:[#allocation5 + $0x18] sm:$0xff]  }
  0x4b   :  { %531 = vmatprep.subr.bf16.mxu1 %v735_v0  ;;  %547 = vmatprep.mubr.msk.bf16.mxu1 %vm736_vm0, %v735_v0  ;;  %v592_v6 = vld [vmem:[#allocation7 + $0x8] sm:$0xff]   ;;  %v586_v7 = vld [vmem:[#allocation5 + $0x20] sm:$0xff]   ;;  %v593_v8 = vld [vmem:[#allocation7 + $0x10] sm:$0xff]  }
  0x4c   :  { %512 = vmatpush3.bf16.msra.mxu0 %v582_v1  ;;  %532 = vmatpush3.bf16.msra.mxu1 %v591_v4  ;;  %v587_v9 = vld [vmem:[#allocation5 + $0x28] sm:$0xff]   ;;  %v594_v10 = vld [vmem:[#allocation7 + $0x18] sm:$0xff]   ;;  %v588_v11 = vld [vmem:[#allocation5 + $0x30] sm:$0xff]  }
  0x4d   :  { %513 = vmatprep.subr.bf16.mxu0 %v735_v0  ;;  %533 = vmatprep.subr.bf16.mxu1 %v735_v0  ;;  %v595_v12 = vld [vmem:[#allocation7 + $0x20] sm:$0xff]   ;;  %v589_v13 = vld [vmem:[#allocation5 + $0x38] sm:$0xff]   ;;  %v596_v14 = vld [vmem:[#allocation7 + $0x28] sm:$0xff]  }
  0x4e   :  { %v590_v15 = vld [vmem:[#allocation2] sm:$0xff]   ;;  %v597_v16 = vld [vmem:[#allocation7 + $0x30] sm:$0xff]   ;;  %v599_v18 = vld [vmem:[#allocation8] sm:$0xff]  }
  0x4f   :  { %v598_v17 = vld [vmem:[#allocation7 + $0x38] sm:$0xff]   ;;  %v600_v19 = vld [vmem:[#allocation8 + $0x8] sm:$0xff]   ;;  %v601_v20 = vld [vmem:[#allocation8 + $0x10] sm:$0xff]  }
  0x50   :  { %514 = vmatpush3.bf16.msra.mxu0 %v583_v2  ;;  %534 = vmatpush3.bf16.msra.mxu1 %v592_v6  ;;  %v602_v21 = vld [vmem:[#allocation8 + $0x18] sm:$0xff]   ;;  %v603_v22 = vld [vmem:[#allocation8 + $0x20] sm:$0xff]   ;;  %v604_v23 = vld [vmem:[#allocation8 + $0x28] sm:$0xff]  }
  0x51   :  { %515 = vmatprep.subr.bf16.mxu0 %v735_v0  ;;  %535 = vmatprep.subr.bf16.mxu1 %v735_v0  ;;  %v456_v24 = vld [vmem:[%s909_s4] ss:$0 sm:$0xff]  ;;  %v605_v34 = vld [vmem:[#allocation8 + $0x30] sm:$0xff]  }
  0x52   :  { %v606_v35 = vld [vmem:[#allocation8 + $0x38] sm:$0xff]  }
  0x53   :  { %v466_v36 = vld [vmem:[%s910_s5] ss:$0 sm:$0xff]  ;;  %s737_s5 = smov [#allocation10]  }
  0x54   :  { %516 = vmatpush3.bf16.msra.mxu0 %v584_v3  ;;  %536 = vmatpush3.bf16.msra.mxu1 %v593_v8  ;;  %v475_v46 = vld [vmem:[%s911_s6] ss:$0 sm:$0xff]  ;;  %s442_s29 = sshll.u32 %s737_s5, 4  ;;  %s443_s29 = int_to_ptr.vmem [resolvable:$true] %s442_s29 }
  0x55   :  { %517 = vmatprep.subr.bf16.mxu0 %v735_v0  ;;  %537 = vmatprep.subr.bf16.mxu1 %v735_v0  ;;  %s699_s30 = scalar_lea.vmem %s443_s29, 256  ;;  %p704_p5 = scmp.lt.s32.totalorder %s443_s29, %s443_s29 }
  0x56   :  { %p700_p4 = scmp.ne.s32.totalorder %s443_s29, %s699_s30  ;;  %p705_p6 = scmp.lt.s32.totalorder %s699_s30, %s699_s30 }
  0x58   :  { %518 = vmatpush3.bf16.msra.mxu0 %v585_v5  ;;  %538 = vmatpush3.bf16.msra.mxu1 %v594_v10  ;;  %p706_p7 = por %p705_p6, %p704_p5 }
  0x59   :  { %519 = vmatprep.subr.bf16.mxu0 %v735_v0  ;;  %539 = vmatprep.subr.bf16.mxu1 %v735_v0 }
  0x5a   :  { %p707_p8 = pnand %p706_p7, %p700_p4 }
  0x5c   :  { %520 = vmatpush3.bf16.msra.mxu0 %v586_v7  ;;  %540 = vmatpush3.bf16.msra.mxu1 %v595_v12 }
  0x5d   :  { %521 = vmatprep.subr.bf16.mxu0 %v735_v0  ;;  %541 = vmatprep.subr.bf16.mxu1 %v735_v0 }
  0x60   :  { %522 = vmatpush3.bf16.msra.mxu0 %v587_v9  ;;  %542 = vmatpush3.bf16.msra.mxu1 %v596_v14 }
  0x61   :  { %523 = vmatprep.subr.bf16.mxu0 %v735_v0  ;;  %543 = vmatprep.subr.bf16.mxu1 %v735_v0 }
  0x64   :  { %524 = vmatpush3.bf16.msra.mxu0 %v588_v11  ;;  %544 = vmatpush3.bf16.msra.mxu1 %v597_v16 }
  0x65   :  { %525 = vmatprep.subr.bf16.mxu0 %v735_v0  ;;  %545 = vmatprep.subr.bf16.mxu1 %v735_v0 }
  0x68   :  { %526 = vmatpush3.bf16.msra.mxu0 %v589_v13  ;;  %546 = vmatpush3.bf16.msra.mxu1 %v598_v17 }
  0x69   :  { %551 = vmatprep.subr.bf16.mxu0 %v735_v0 }
  0x6b   :  { %528 = vmatmul.mubr.bf16.vlgmr.msra.gmra.mrb[0].mxu0 %v590_v15 }
  0x6c   :  { %567 = vmatprep.mubr.msk.bf16.mxu0 %vm736_vm0, %v735_v0  ;;  %552 = vmatpush3.bf16.msra.mxu0 %v599_v18 }
  0x6d   :  { %553 = vmatprep.subr.bf16.mxu0 %v735_v0 }
  0x70   :  { %554 = vmatpush3.bf16.msra.mxu0 %v600_v19 }
  0x71   :  { %555 = vmatprep.subr.bf16.mxu0 %v735_v0 }
  0x74   :  { %556 = vmatpush3.bf16.msra.mxu0 %v601_v20 }
  0x75   :  { %557 = vmatprep.subr.bf16.mxu0 %v735_v0 }
  0x78   :  { %558 = vmatpush3.bf16.msra.mxu0 %v602_v21 }
  0x79   :  { %559 = vmatprep.subr.bf16.mxu0 %v735_v0 }
  0x7c   :  { %560 = vmatpush3.bf16.msra.mxu0 %v603_v22 }
  0x7d   :  { %561 = vmatprep.subr.bf16.mxu0 %v735_v0 }
  0x80   :  { %562 = vmatpush3.bf16.msra.mxu0 %v604_v23 }
  0x81   :  { %563 = vmatprep.subr.bf16.mxu0 %v735_v0 }
  0x84   :  { %564 = vmatpush3.bf16.msra.mxu0 %v605_v34 }
  0x85   :  { %565 = vmatprep.subr.bf16.mxu0 %v735_v0 }
  0x88   :  { %566 = vmatpush3.bf16.msra.mxu0 %v606_v35 }
 0x13e   :  { %v196_v25 = vpop.f32.mrb[0].mxu0 }
 0x13f   :  { %v197_v26 = vadd.f32 %v456_v24, %v196_v25  ;;  %v529_v27 = vpop.f32.mrb[1].mxu0 }
 0x140   :  { %v199_v28 = vpop.f32.mrb[2].mxu0 }
 0x141   :  { %v200_v29 = vadd.f32 %v456_v24, %v199_v28  ;;  %v530_v30 = vpop.f32.mrb[3].mxu0  ;;  %v203_v31 = vmax.f32 %v197_v26, 0.0 }
 0x143   :  { %v204_v32 = vmax.f32 %v200_v29, 0.0 }
 0x145   :  { %v205_v33 = vpack.c.bf16 %v204_v32, %v203_v31 }
 0x147   :  { %548 = vmatmul.mubr.bf16.vlgmr.msra.gmra.mrb[0].mxu1 %v205_v33 }
 0x21a   :  { %v311_v37 = vpop.f32.mrb[0].mxu1 }
 0x21b   :  { %v312_v38 = vadd.f32 %v466_v36, %v311_v37  ;;  %v549_v39 = vpop.f32.mrb[1].mxu1 }
 0x21c   :  { %v314_v40 = vpop.f32.mrb[2].mxu1 }
 0x21d   :  { %v315_v41 = vadd.f32 %v466_v36, %v314_v40  ;;  %v550_v42 = vpop.f32.mrb[3].mxu1  ;;  %v318_v43 = vmax.f32 %v312_v38, 0.0 }
 0x21f   :  { %v319_v44 = vmax.f32 %v315_v41, 0.0 }
 0x221   :  { %v320_v45 = vpack.c.bf16 %v319_v44, %v318_v43 }
 0x223   :  { %568 = vmatmul.mubr.bf16.vlgmr.msra.gmra.mrb[4].mxu0 %v320_v45 }
 0x2f6   :  { %v426_v47 = vpop.f32.mrb[4].mxu0 }
 0x2f7   :  { %v427_v48 = vadd.f32 %v475_v46, %v426_v47  ;;  %v569_v49 = vpop.f32.mrb[5].mxu0 }
 0x2f8   :  { %v429_v50 = vpop.f32.mrb[6].mxu0 }
 0x2f9   :  { %607 = vtanh.f32 %v427_v48  ;;  %v430_v51 = vadd.f32 %v475_v46, %v429_v50  ;;  %v570_v52 = vpop.f32.mrb[7].mxu0 }
 0x2fb   :  { %609 = vtanh.f32 %v430_v51 }
 0x303   :  { %v608_v53 = vpop.eup %607 }
 0x304   :  { %435 = vst [vmem:[#allocation10] sm:$0xff] %v608_v53 }
 0x305   :  { %v610_v54 = vpop.eup %609 }
 0x306   :  { %436 = vst [vmem:[#allocation10 + $0x8] sm:$0xff] %v610_v54 }
 0x307   :  { %710 = shalt.err (!%p707_p8)
}
 0x308   :  { %s711_s9 = scalar_lea.hbm %s912_s7, 256 }
 0x309   :  { %p712_p9 = scmp.ne.s32.totalorder %s912_s7, %s711_s9  ;;  %p715_p10 = scmp.lt.u32.totalorder %s711_s9, %s912_s7 }
 0x30b   :  { %p717_p11 = pnand %p715_p10, %p712_p9 }
 0x30d   :  { %720 = shalt.err (!%p717_p11)
}
 0x30e   :  { %s738_s16 = smov 128   ;;  %s739_s0 = smov 8  }
 0x30f   :  { %448 = dma.vmem_to_hbm [thread:$0]  %s443_s29, 256, %s912_s7, [#allocation4], %s738_s16, %s738_s16, %s739_s0  }
 0x310   :  { %727 = dma.done.wait [#allocation4], 256  }
 0x311   :  { %728 = vsyncadd [#allocation4], 4294967040 }
 0x312   :  { %452 = vsyncpa [#allocation3], 1 }
 0x313   :  { %453 = vsyncpa [#allocation6], 1 }
 0x314   :  { %454 = vsyncpa [#allocation9], 1 }
 0x315   :  { %455 = vsyncpa [#allocation4], 1 }

</bundles_post_ra>
